<compile_context>
chip_gen: v7x
topology: tpu7x:2x2x1
jax: 0.10.0
libtpu: 0.0.40
codegen_flags: <defaults>
</compile_context>

<pallas_src>
import functools

import jax
import jax.numpy as jnp
import numpy as np
from jax.experimental import pallas as pl
from jax.experimental.pallas import tpu as pltpu


def _round_up(x, m):
    return ((x + m - 1) // m) * m


_MAX_SINGLE_BLOCK = 4096   # grid=(1,) below this: SAC batches are launch/step-latency bound
_MAX_TILE = 8192           # ~28-32 MiB VMEM @ ~3.5 KiB/row: safe under v7x's 64 MiB/TC


def _critic_kernel(n_layers, reduce_last, x_ref, *refs):
    """refs = (w0, b0, w1, b1, ..., w_{L-1}, b_{L-1}, out).

    x_ref: (tb, in_dim) bf16 packed [state | action] tile.
    Weights are bf16 (in, out); the last weight is (1, hidden) when reduce_last.
    Biases are f32 (1, out).
    """
    o_ref = refs[-1]
    params = refs[:-1]

    # Layer 0: raw (non-ReLU'd) packed input, single MXU pass, f32 accumulation.
    w0 = params[0][...]
    b0 = params[1][...]
    x = jnp.dot(x_ref[...], w0, preferred_element_type=jnp.float32) + b0

    # Hidden layers 1..L-2: bf16 ReLU on the layer input, bf16 matmul, f32 accumulate.
    for i in range(1, n_layers - 1):
        w = params[2 * i][...]
        b = params[2 * i + 1][...]
        xb = jnp.maximum(x.astype(w.dtype), 0.0)
        x = jnp.dot(xb, w, preferred_element_type=jnp.float32) + b

    # Last layer.
    w_last = params[2 * (n_layers - 1)]
    b_last = params[2 * (n_layers - 1) + 1][...]
    xb = jnp.maximum(x.astype(jnp.bfloat16), 0.0)
    if reduce_last:
        # out_features == 1: VPU multiply + lane reduction instead of an N=1 MXU pass.
        w_row = w_last[...].astype(jnp.float32)                       # (1, hidden)
        x = jnp.sum(xb.astype(jnp.float32) * w_row, axis=-1, keepdims=True) + b_last
    else:
        x = jnp.dot(xb, w_last[...], preferred_element_type=jnp.float32) + b_last

    o_ref[...] = x.astype(o_ref.dtype)


def critic_forward(state, action, weights, biases, *, block_b=None,
                   compute_dtype=jnp.bfloat16):
    """Full critic MLP in one pallas_call, batch-tiled with VMEM-resident weights."""
    n_layers = len(weights)
    assert n_layers >= 2, "CriticNetwork always has >= 2 Linear layers"
    batch = state.shape[0]
    in_dim = state.shape[1] + action.shape[1]
    assert weights[0].shape[0] == in_dim
    out_dim = weights[-1].shape[1]
    cd = compute_dtype

    # ---- batch tile selection (multiples of 16: bf16 sublane packing) ----------------
    if block_b is None:
        if batch <= _MAX_SINGLE_BLOCK:
            tb = _round_up(max(batch, 1), 16)                  # one block, grid=(1,)
        else:
            # >= 2 grid steps (v7x megacore + pipelining), capped for v7x VMEM.
            tb = min(_MAX_TILE, _round_up(pl.cdiv(batch, 2), 16))
    else:
        tb = min(_MAX_TILE, _round_up(max(min(block_b, batch), 16), 16))
    padded = _round_up(batch, tb)
    grid = (padded // tb,)

    # ---- pack [state | action] -> one lane-padded bf16 array (single fused XLA op) ---
    x = jnp.concatenate([state, action], axis=1).astype(cd)
    if padded != batch:
        x = jnp.pad(x, ((0, padded - batch), (0, 0)))

    # ---- parameters: bf16 weights, f32 biases; last weight as a (1, hidden) row ------
    reduce_last = (out_dim == 1)
    params = []
    for i, (w, b) in enumerate(zip(weights, biases)):
        if i == n_layers - 1 and reduce_last:
            params.append(w.T.astype(cd))                      # (1, hidden)
        else:
            params.append(w.astype(cd))
        params.append(b.astype(jnp.float32))

    # ---- specs: activations batch-tiled, params VMEM-resident (constant index_map) ---
    x_spec = pl.BlockSpec((tb, in_dim), lambda i: (i, 0))

    def resident(arr):
        return pl.BlockSpec(arr.shape, lambda i: (0, 0))

    in_specs = [x_spec] + [resident(p) for p in params]
    out_spec = pl.BlockSpec((tb, out_dim), lambda i: (i, 0))

    # ~3.5 KiB/row covers the double-buffered bf16 input tile, f32 output tile and the
    # 128-lane-padded f32 activation scratch; cap at 48 MiB for v7x headroom.
    bytes_per_row = 3584
    vmem_limit = int(min(48 * 2**20, max(16 * 2**20, tb * bytes_per_row + 4 * 2**20)))

    kernel = functools.partial(_critic_kernel, n_layers, reduce_last)

    out = pl.pallas_call(
        kernel,
        out_shape=jax.ShapeDtypeStruct((padded, out_dim), jnp.float32),
        grid=grid,
        in_specs=in_specs,
        out_specs=out_spec,
        compiler_params=pltpu.CompilerParams(
            dimension_semantics=("parallel",),
            vmem_limit_bytes=vmem_limit,
        ),
    )(x, *params)

    out = out[:batch]
    # torch.squeeze(x): drop all size-1 dims (batch==1 yields a scalar, matching PyTorch).
    return jnp.squeeze(out)


def init_params(key, in_dim, layer_sizes, out_dim):
    """Deterministic init mimicking torch.nn.Linear default U(-1/sqrt(fan_in), 1/sqrt(fan_in))."""
    dims = [in_dim] + list(layer_sizes) + [out_dim]
    weights, biases = [], []
    for i in range(len(dims) - 1):
        fan_in, fan_out = dims[i], dims[i + 1]
        key, kw, kb = jax.random.split(key, 3)
        bound = 1.0 / np.sqrt(fan_in)
        w = jax.random.uniform(kw, (fan_in, fan_out), jnp.float32, -bound, bound)  # (in, out) == torch weight.T
        b = jax.random.uniform(kb, (1, fan_out), jnp.float32, -bound, bound)
        weights.append(w)
        biases.append(b)
    return weights, biases


def critic_reference(state, action, weights, biases, compute_dtype=jnp.bfloat16):
    """Plain-JAX reference with matching bf16-in / f32-accumulate numerics."""
    cd = compute_dtype
    x = jnp.concatenate([state, action], axis=1).astype(cd)
    for i, (w, b) in enumerate(zip(weights, biases)):
        if i > 0:
            x = jnp.maximum(x, 0.0).astype(cd)
        x = jnp.dot(x, w.astype(cd), preferred_element_type=jnp.float32) + b
    return jnp.squeeze(x)


if __name__ == "__main__":
    # Small shapes consistent with the module: state_dim + action_dim == input_shape[0].
    batch = 8
    state_dim = 12
    action_dim = 4
    layer_sizes = [32, 32]
    out_dim = 1  # output_shape = (1,)

    key = jax.random.PRNGKey(0)
    key, ks, ka = jax.random.split(key, 3)
    state = jax.random.normal(ks, (batch, state_dim), jnp.float32)
    action = jax.random.normal(ka, (batch, action_dim), jnp.float32)

    weights, biases = init_params(key, state_dim + action_dim, layer_sizes, out_dim)

    q = critic_forward(state, action, weights, biases)
    q = jax.block_until_ready(q)

    q_ref = critic_reference(state, action, weights, biases)
    assert q.shape == (batch,), q.shape
    np.testing.assert_allclose(np.asarray(q), np.asarray(q_ref), rtol=1e-2, atol=1e-2)

    print("KERNEL_OK")
</pallas_src>

<mosaic_0001>
module attributes {stable_mosaic.version = 11 : i64} {
  func.func @_critic_kernel(%arg0: i32, %arg1: memref<16x16xbf16, #tpu.memory_space<vmem>>, %arg2: memref<16x32xbf16, #tpu.memory_space<vmem>>, %arg3: memref<1x32xf32, #tpu.memory_space<vmem>>, %arg4: memref<32x32xbf16, #tpu.memory_space<vmem>>, %arg5: memref<1x32xf32, #tpu.memory_space<vmem>>, %arg6: memref<1x32xbf16, #tpu.memory_space<vmem>>, %arg7: memref<1x1xf32, #tpu.memory_space<vmem>>, %arg8: memref<16x1xf32, #tpu.memory_space<vmem>>) attributes {dimension_semantics = [#tpu.dimension_semantics<parallel>], iteration_bounds = array<i64: 1>, scalar_prefetch = 0 : i64, scratch_operands = 0 : i64, tpu.core_type = #tpu.core_type<tc>, window_params = [{transform_indices = @transform_0, window_bounds = array<i64: 16, 16>}, {pipeline_mode = #tpu.pipeline_mode<synchronous>, transform_indices = @transform_1, window_bounds = array<i64: 16, 32>}, {pipeline_mode = #tpu.pipeline_mode<synchronous>, transform_indices = @transform_2, window_bounds = array<i64: 1, 32>}, {pipeline_mode = #tpu.pipeline_mode<synchronous>, transform_indices = @transform_3, window_bounds = array<i64: 32, 32>}, {pipeline_mode = #tpu.pipeline_mode<synchronous>, transform_indices = @transform_4, window_bounds = array<i64: 1, 32>}, {pipeline_mode = #tpu.pipeline_mode<synchronous>, transform_indices = @transform_5, window_bounds = array<i64: 1, 32>}, {pipeline_mode = #tpu.pipeline_mode<synchronous>, transform_indices = @transform_6, window_bounds = array<i64: 1, 1>}, {transform_indices = @transform_7, window_bounds = array<i64: 16, 1>}]} {
    %c0 = arith.constant 0 : index
    %c0_0 = arith.constant 0 : index
    %0 = vector.load %arg2[%c0, %c0_0] : memref<16x32xbf16, #tpu.memory_space<vmem>>, vector<16x32xbf16>
    %c0_1 = arith.constant 0 : index
    %c0_2 = arith.constant 0 : index
    %1 = vector.load %arg3[%c0_1, %c0_2] : memref<1x32xf32, #tpu.memory_space<vmem>>, vector<1x32xf32>
    %c0_3 = arith.constant 0 : index
    %c0_4 = arith.constant 0 : index
    %2 = vector.load %arg1[%c0_3, %c0_4] : memref<16x16xbf16, #tpu.memory_space<vmem>>, vector<16x16xbf16>
    %cst = arith.constant dense<0.000000e+00> : vector<16x32xf32>
    %3 = tpu.matmul %2, %0, %cst {dimension_numbers = #tpu.dot_dimension_numbers<[1], [0], [0], [1], [0, 0, 1, 1], [], []>} : vector<16x16xbf16>, vector<16x32xbf16>, vector<16x32xf32> -> vector<16x32xf32>
    %4 = vector.broadcast %1 : vector<1x32xf32> to vector<16x32xf32>
    %5 = arith.addf %3, %4 : vector<16x32xf32>
    %c0_5 = arith.constant 0 : index
    %c0_6 = arith.constant 0 : index
    %6 = vector.load %arg4[%c0_5, %c0_6] : memref<32x32xbf16, #tpu.memory_space<vmem>>, vector<32x32xbf16>
    %c0_7 = arith.constant 0 : index
    %c0_8 = arith.constant 0 : index
    %7 = vector.load %arg5[%c0_7, %c0_8] : memref<1x32xf32, #tpu.memory_space<vmem>>, vector<1x32xf32>
    %8 = arith.truncf %5 : vector<16x32xf32> to vector<16x32xbf16>
    %cst_9 = arith.constant 0.000000e+00 : bf16
    %9 = vector.broadcast %cst_9 : bf16 to vector<16x32xbf16>
    %10 = arith.maximumf %8, %9 : vector<16x32xbf16>
    %cst_10 = arith.constant dense<0.000000e+00> : vector<16x32xf32>
    %11 = tpu.matmul %10, %6, %cst_10 {dimension_numbers = #tpu.dot_dimension_numbers<[1], [0], [0], [1], [0, 0, 1, 1], [], []>} : vector<16x32xbf16>, vector<32x32xbf16>, vector<16x32xf32> -> vector<16x32xf32>
    %12 = vector.broadcast %7 : vector<1x32xf32> to vector<16x32xf32>
    %13 = arith.addf %11, %12 : vector<16x32xf32>
    %c0_11 = arith.constant 0 : index
    %c0_12 = arith.constant 0 : index
    %14 = vector.load %arg7[%c0_11, %c0_12] : memref<1x1xf32, #tpu.memory_space<vmem>>, vector<1x1xf32>
    %15 = arith.truncf %13 : vector<16x32xf32> to vector<16x32xbf16>
    %cst_13 = arith.constant 0.000000e+00 : bf16
    %16 = vector.broadcast %cst_13 : bf16 to vector<16x32xbf16>
    %17 = arith.maximumf %15, %16 : vector<16x32xbf16>
    %c0_14 = arith.constant 0 : index
    %c0_15 = arith.constant 0 : index
    %18 = vector.load %arg6[%c0_14, %c0_15] : memref<1x32xbf16, #tpu.memory_space<vmem>>, vector<1x32xbf16>
    %19 = arith.extf %18 : vector<1x32xbf16> to vector<1x32xf32>
    %20 = arith.extf %17 : vector<16x32xbf16> to vector<16x32xf32>
    %21 = vector.broadcast %19 : vector<1x32xf32> to vector<16x32xf32>
    %22 = arith.mulf %20, %21 : vector<16x32xf32>
    %cst_16 = arith.constant dense<0.000000e+00> : vector<16xf32>
    %23 = vector.multi_reduction <add>, %22, %cst_16 [1] : vector<16x32xf32> to vector<16xf32>
    %24 = vector.shape_cast %23 : vector<16xf32> to vector<16x1xf32>
    %25 = vector.broadcast %14 : vector<1x1xf32> to vector<16x1xf32>
    %26 = arith.addf %24, %25 : vector<16x1xf32>
    %c0_17 = arith.constant 0 : index
    %c0_18 = arith.constant 0 : index
    %27 = vector.load %arg8[%c0_17, %c0_18] : memref<16x1xf32, #tpu.memory_space<vmem>>, vector<16x1xf32>
    tpu.vector_store %arg8[%c0_17, %c0_18], %26 {strides = array<i32>} : memref<16x1xf32, #tpu.memory_space<vmem>>, vector<16x1xf32>,
    return
  }
  func.func @transform_0(%arg0: i32) -> (i32, i32) {
    %c0_i32 = arith.constant 0 : i32
    %c0_i32_0 = arith.constant 0 : i32
    return %arg0, %c0_i32 : i32, i32
  }
  func.func @transform_1(%arg0: i32) -> (i32, i32) {
    %c0_i32 = arith.constant 0 : i32
    %c0_i32_0 = arith.constant 0 : i32
    %c0_i32_1 = arith.constant 0 : i32
    return %c0_i32, %c0_i32_0 : i32, i32
  }
  func.func @transform_2(%arg0: i32) -> (i32, i32) {
    %c0_i32 = arith.constant 0 : i32
    %c0_i32_0 = arith.constant 0 : i32
    %c0_i32_1 = arith.constant 0 : i32
    return %c0_i32, %c0_i32_0 : i32, i32
  }
  func.func @transform_3(%arg0: i32) -> (i32, i32) {
    %c0_i32 = arith.constant 0 : i32
    %c0_i32_0 = arith.constant 0 : i32
    %c0_i32_1 = arith.constant 0 : i32
    return %c0_i32, %c0_i32_0 : i32, i32
  }
  func.func @transform_4(%arg0: i32) -> (i32, i32) {
    %c0_i32 = arith.constant 0 : i32
    %c0_i32_0 = arith.constant 0 : i32
    %c0_i32_1 = arith.constant 0 : i32
    return %c0_i32, %c0_i32_0 : i32, i32
  }
  func.func @transform_5(%arg0: i32) -> (i32, i32) {
    %c0_i32 = arith.constant 0 : i32
    %c0_i32_0 = arith.constant 0 : i32
    %c0_i32_1 = arith.constant 0 : i32
    return %c0_i32, %c0_i32_0 : i32, i32
  }
  func.func @transform_6(%arg0: i32) -> (i32, i32) {
    %c0_i32 = arith.constant 0 : i32
    %c0_i32_0 = arith.constant 0 : i32
    %c0_i32_1 = arith.constant 0 : i32
    return %c0_i32, %c0_i32_0 : i32, i32
  }
  func.func @transform_7(%arg0: i32) -> (i32, i32) {
    %c0_i32 = arith.constant 0 : i32
    %c0_i32_0 = arith.constant 0 : i32
    return %arg0, %c0_i32 : i32, i32
  }
}

</mosaic_0001>

<bundles_post_ra>
// kernel: tpu_custom_call.1
= control target key start
LH: loop header
LB: loop body
LE: loop exit
PB: predicated region body
PF: predicated region fallthrough
CT: control target
= control target key end

     0   :  { %s474_s0 = inlined_call_operand.hbm [shape: bf16[16,16], index: 0, kind: input, shape index: {}]   ;;  %s475_s1 = inlined_call_operand.hbm [shape: bf16[16,32], index: 1, kind: input, shape index: {}]   ;;  %s476_s2 = inlined_call_operand.vmem [shape: f32[1,32], index: 2, kind: input, shape index: {}]   ;;  %s477_s3 = inlined_call_operand.hbm [shape: bf16[32,32], index: 3, kind: input, shape index: {}]   ;;  %s478_s4 = inlined_call_operand.vmem [shape: f32[1,32], index: 4, kind: input, shape index: {}]   ;;  %s479_s5 = inlined_call_operand.vmem [shape: bf16[1,32], index: 5, kind: input, shape index: {}]   ;;  %s480_s6 = inlined_call_operand.<no memory space> [shape: f32[1,1], index: 6, kind: input, shape index: {}]   ;;  %s481_s7 = inlined_call_operand.vmem [shape: f32[16,1], index: 7, kind: output, shape index: {}]  }
   0x1   :  { %v12_v0 = vstv %s480_s6 }
   0x2   :  { %13 = vst [vmem:[#allocation2] sm:$0x1] %v12_v0 }
   0x3   :  { %14 = vsyncpa [#allocation4], 0 }
   0x4   :  { %15 = vsyncpa [#allocation6], 0  ;;  %s353_s26 = smov [#allocation5]   ;;  %s354_s28 = smov [#allocation3]  }
   0x5   :  { %s33_s27 = sshll.u32 %s353_s26, 4  ;;  %s21_s29 = sshll.u32 %s354_s28, 4  ;;  %s34_s27 = int_to_ptr.vmem [resolvable:$true] %s33_s27  ;;  %s404_s29 = int_to_ptr.vmem [resolvable:$true] %s21_s29 }
   0x6   :  { %s283_s9 = scalar_lea.hbm %s475_s1, 128 }
   0x7   :  { %p284_p0 = scmp.ne.s32.totalorder %s475_s1, %s283_s9  ;;  %p287_p1 = scmp.lt.u32.totalorder %s283_s9, %s475_s1 }
   0x9   :  { %p289_p2 = pnand %p287_p1, %p284_p0 }
   0xb   :  { %292 = shalt.err (!%p289_p2)
}
   0xc   :  { %s293_s13 = scalar_lea.vmem %s34_s27, 128  ;;  %p298_p4 = scmp.lt.s32.totalorder %s34_s27, %s34_s27 }
   0xd   :  { %p294_p3 = scmp.ne.s32.totalorder %s34_s27, %s293_s13  ;;  %p299_p5 = scmp.lt.s32.totalorder %s293_s13, %s293_s13 }
   0xf   :  { %p300_p6 = por %p299_p5, %p298_p4 }
  0x11   :  { %p301_p7 = pnand %p300_p6, %p294_p3 }
  0x13   :  { %304 = shalt.err (!%p301_p7)
}
  0x14   :  { %s355_s14 = smov 64   ;;  %s356_s15 = smov 4  }
  0x15   :  { %39 = dma.hbm_to_vmem [thread:$0]  %s475_s1, 128, %s34_s27, [#allocation6], %s355_s14, %s355_s14, %s356_s15  }
  0x16   :  { %s305_s20 = scalar_lea.hbm %s474_s0, 128 }
  0x17   :  { %p306_p8 = scmp.ne.s32.totalorder %s474_s0, %s305_s20  ;;  %p309_p9 = scmp.lt.u32.totalorder %s305_s20, %s474_s0 }
  0x19   :  { %p311_p10 = pnand %p309_p9, %p306_p8 }
  0x1b   :  { %314 = shalt.err (!%p311_p10)
}
  0x1c   :  { %s315_s25 = scalar_lea.vmem %s404_s29, 128  ;;  %p320_p12 = scmp.lt.s32.totalorder %s404_s29, %s404_s29 }
  0x1d   :  { %p316_p11 = scmp.ne.s32.totalorder %s404_s29, %s315_s25  ;;  %p321_p13 = scmp.lt.s32.totalorder %s315_s25, %s315_s25 }
  0x1f   :  { %p322_p0 = por %p321_p13, %p320_p12 }
  0x21   :  { %p323_p1 = pnand %p322_p0, %p316_p11 }
  0x23   :  { %326 = shalt.err (!%p323_p1)
}
  0x24   :  { %27 = dma.hbm_to_vmem [thread:$0]  %s474_s0, 128, %s404_s29, [#allocation4], %s355_s14, %s355_s14, %s356_s15  }
  0x25   :  { %s357_s27 = smov [#allocation7]   ;;  %s327_s9 = scalar_lea.hbm %s477_s3, 256 }
  0x26   :  { %s47_s28 = sshll.u32 %s357_s27, 4  ;;  %p328_p2 = scmp.ne.s32.totalorder %s477_s3, %s327_s9  ;;  %s48_s28 = int_to_ptr.vmem [resolvable:$true] %s47_s28 }
  0x27   :  { %p331_p3 = scmp.lt.u32.totalorder %s327_s9, %s477_s3 }
  0x29   :  { %p333_p4 = pnand %p331_p3, %p328_p2 }
  0x2b   :  { %336 = shalt.err (!%p333_p4)
}
  0x2c   :  { %s337_s13 = scalar_lea.vmem %s48_s28, 256  ;;  %p342_p6 = scmp.lt.s32.totalorder %s48_s28, %s48_s28 }
  0x2d   :  { %p338_p5 = scmp.ne.s32.totalorder %s48_s28, %s337_s13  ;;  %p343_p7 = scmp.lt.s32.totalorder %s337_s13, %s337_s13 }
  0x2f   :  { %p344_p8 = por %p343_p7, %p342_p6 }
  0x31   :  { %p345_p9 = pnand %p344_p8, %p338_p5 }
  0x33   :  { %348 = shalt.err (!%p345_p9)
}
  0x34   :  { %53 = dma.hbm_to_vmem [thread:$0]  %s477_s3, 256, %s48_s28, [#allocation6], %s355_s14, %s355_s14, %s356_s15  }
  0x35   :  { %349 = dma.done.wait [#allocation4], 128  }
  0x36   :  { %350 = vsyncadd [#allocation4], 4294967168 }
  0x37   :  { %351 = dma.done.wait [#allocation6], 384  }
  0x38   :  { %352 = vsyncadd [#allocation6], 4294966912  ;;  %v358_v1 = vmov 0.0   ;;  %vm359_vm0 = vmmov 0   ;;  %v279_v2 = vld [vmem:[#allocation5] sm:$0xff]   ;;  %v280_v3 = vld [vmem:[#allocation3] sm:$0xff]   ;;  %v214_v16 = vlaneseq }
  0x39   :  { %257 = vmatprep.subr.bf16.mxu0 %v358_v1  ;;  %259 = vmatprep.mubr.msk.bf16.mxu0 %vm359_vm0, %v358_v1  ;;  %vm92_vm1 = vcmask 130048   ;;  %v281_v4 = vld [vmem:[#allocation7] sm:$0xff]   ;;  %v282_v5 = vld [vmem:[#allocation7 + $0x8] sm:$0xff]   ;;  %vm162_vm2 = vcmask 261120   ;;  %v360_v14 = vmov 0   ;;  %vm234_vm3 = vcmask 7168  }
  0x3a   :  { %263 = vmatprep.subr.bf16.mxu1 %v358_v1  ;;  %267 = vmatprep.mubr.msk.bf16.mxu1 %vm359_vm0, %v358_v1  ;;  %v243_v6 = vld [vmem:[%s476_s2] ss:$0 sm:$0xff]  ;;  %v215_v17 = vshrl.u32 %v214_v16, 7 }
  0x3b   :  { %258 = vmatpush3.bf16.msra.mxu0 %v279_v2  ;;  %264 = vmatpush3.bf16.msra.mxu1 %v281_v4  ;;  %v247_v18 = vld [vmem:[%s478_s4] ss:$0 sm:$0xff] }
  0x3c   :  { %265 = vmatprep.subr.bf16.mxu1 %v358_v1  ;;  %v210_v20 = vld [vmem:[%s479_s5] sm:$0x1]  ;;  %v216_v27 = vsub.s32 0, %v215_v17 }
  0x3d   :  { %v211_v26 = vunpack.c.l.bf16 %v210_v20  ;;  %v251_v37 = vld [vmem:[#allocation2] ss:$0 sm:$0xff] }
  0x3e   :  { %260 = vmatmul.mubr.msk.bf16.vlgmr.msra.gmra.mrb[0].mxu0 %vm92_vm1, %v280_v3 }
  0x3f   :  { %266 = vmatpush3.bf16.msra.mxu1 %v282_v5  ;;  %v217_v30 = vrot.slane %v211_v26, %v216_v27 }
 0x111   :  { %v130_v7 = vpop.f32.mrb[0].mxu0 }
 0x112   :  { %v261_v8 = vpop.f32.mrb[1].mxu0  ;;  %v131_v10 = vadd.f32 %v243_v6, %v130_v7 }
 0x113   :  { %v133_v9 = vpop.f32.mrb[2].mxu0 }
 0x114   :  { %v134_v11 = vadd.f32 %v243_v6, %v133_v9  ;;  %v262_v12 = vpop.f32.mrb[3].mxu0 }
 0x116   :  { %v142_v13 = vpack.c.bf16 %v134_v11, %v131_v10 }
 0x118   :  { %v143_v15 = vmax.bf16 %v360_v14, %v142_v13 }
 0x11a   :  { %268 = vmatmul.mubr.msk.bf16.vlgmr.msra.gmra.mrb[0].mxu1 %vm162_vm2, %v143_v15 }
 0x1ed   :  { %v200_v19 = vpop.f32.mrb[0].mxu1 }
 0x1ee   :  { %v269_v21 = vpop.f32.mrb[1].mxu1  ;;  %v201_v23 = vadd.f32 %v247_v18, %v200_v19 }
 0x1ef   :  { %v203_v22 = vpop.f32.mrb[2].mxu1 }
 0x1f0   :  { %v204_v24 = vadd.f32 %v247_v18, %v203_v22  ;;  %v270_v25 = vpop.f32.mrb[3].mxu1 }
 0x1f2   :  { %v208_v28 = vpack.c.bf16 %v204_v24, %v201_v23 }
 0x1f4   :  { %v209_v29 = vmax.bf16 %v360_v14, %v208_v28 }
 0x1f6   :  { %v212_v31 = vunpack.c.l.bf16 %v209_v29  ;;  %v213_v32 = vunpack.c.h.bf16 %v209_v29 }
 0x1f8   :  { %v218_v33 = vmul.f32 %v217_v30, %v212_v31  ;;  %v219_v35 = vmul.f32 %v217_v30, %v213_v32 }
 0x1fa   :  { %v220_v34 = vsel %vm162_vm2, %v218_v33, 0.0  ;;  %v223_v36 = vsel %vm162_vm2, %v219_v35, 0.0 }
 0x1fb   :  { %221 = vadd.xlane.f32.xlu0 %v220_v34 }
 0x1ff   :  { %224 = vadd.xlane.f32.xlu0 %v223_v36 }
 0x288   :  { %v222_v38 = vpop.xlane.xlu0 %221 }
 0x289   :  { %v232_v39 = vadd.f32 %v251_v37, %v222_v38 }
 0x28b   :  { %235 = vst.msk [vmem:[%s481_s7] sm:$0xff] %vm234_vm3, %v232_v39 }
 0x28c   :  { %v225_v40 = vpop.xlane.xlu0 %224 }
 0x28d   :  { %v233_v41 = vadd.f32 %v251_v37, %v225_v40 }
 0x28f   :  { %236 = vst.msk [vmem:[%s481_s7 + $0x8] sm:$0xff] %vm234_vm3, %v233_v41 }
 0x290   :  { %241 = vsyncpa [#allocation4], 1 }
 0x291   :  { %242 = vsyncpa [#allocation6], 1 }

</bundles_post_ra>
